<compile_context>
chip_gen: v7x
topology: tpu7x:2x2x1
jax: 0.10.0
libtpu: 0.0.40
codegen_flags: <defaults>
</compile_context>

<pallas_src>
import math

import jax
import jax.numpy as jnp
from jax.experimental import pallas as pl

# ---------------- small config consistent with the module -------------------
B = 2              # batch
SQ = 8             # query (input_tensor) sequence length
SK = 8             # key/value (ctx_tensor) sequence length
H = 32             # hidden size
CD = 32            # ctx_dim (== hidden_size, module default)
NH = 4             # num_attention_heads
D = H // NH        # attention_head_size
LN_EPS = 1e-12     # BertLayerNorm eps

assert H == CD, "fused [x; c] projection packing relies on ctx_dim == hidden_size"

# lane offsets inside the packed (H, 4H) weight slab [Wo^T | Wq'^T | Wk^T | Wv^T]
WO_OFF, Q_OFF, K_OFF, V_OFF = 0, H, 2 * H, 3 * H


def pack_bert_xattn_params(wq, bq, wk, bk, wv, bv, wo, bo, gamma, beta):
    """One-time (model-init) packing of all call-invariant parameters.

    Returns:
      w_slab: (H, 4H) = [Wo^T | (Wq/sqrt(D))^T | Wk^T | Wv^T]  (one lane-dense 128-lane tile row)
      p_slab: (4, 4H):
        row 0 = [0 | bq/sqrt(D) | bk | bv]   (lane-aligned with w_slab -> one bias-row add)
        row 1 = [bo    | 0 ...]
        row 2 = [gamma | 0 ...]
        row 3 = [beta  | 0 ...]
    The 1/sqrt(D) attention scale is folded into Wq/bq so the kernel never multiplies by it.
    """
    f32 = jnp.float32
    scale = 1.0 / math.sqrt(D)
    w_slab = jnp.concatenate(
        [wo.T, (wq * scale).T, wk.T, wv.T], axis=1).astype(f32)        # (H, 4H) = (32, 128)
    p = jnp.zeros((4, 4 * H), f32)
    p = p.at[0, Q_OFF:Q_OFF + H].set((bq * scale).astype(f32))
    p = p.at[0, K_OFF:K_OFF + H].set(bk.astype(f32))
    p = p.at[0, V_OFF:V_OFF + H].set(bv.astype(f32))
    p = p.at[1, 0:H].set(bo.astype(f32))
    p = p.at[2, 0:H].set(gamma.astype(f32))
    p = p.at[3, 0:H].set(beta.astype(f32))
    return w_slab, p


def _bert_xattn_kernel(x_ref, c_ref, mask_ref, w_ref, p_ref, out_ref, scores_ref):
    """Single-step kernel: everything lives in VMEM.

    x_ref:      (B*SQ, H)        input_tensor (query source + residual)
    c_ref:      (B*SK, CD)       ctx_tensor (key/value source)
    mask_ref:   (B, SK)          additive attention mask, unbroadcast
    w_ref:      (H, 4H)          [Wo^T | (Wq/sqrt(D))^T | Wk^T | Wv^T]
    p_ref:      (4, 4H)          packed biases / LayerNorm affine (see pack_bert_xattn_params)
    out_ref:    (B*SQ, H)        attention_output (post LayerNorm)
    scores_ref: (B*NH, SQ, SK)   pre-softmax (post-scale, post-mask) attention scores
    """
    f32 = jnp.float32
    x = x_ref[...]                                   # (B*SQ, H)
    c = c_ref[...]                                   # (B*SK, CD)

    # --- single fused projection: [x; c] @ [Wo^T | Wq'^T | Wk^T | Wv^T] + bias row ---
    # Q' rows 0..B*SQ-1 / lanes Q_OFF.., K rows B*SQ.. / lanes K_OFF.., V rows B*SQ.. / lanes V_OFF..
    xc = jnp.concatenate([x, c], axis=0)             # (B*SQ + B*SK, H) sublane concat (cheap)
    proj = jnp.dot(xc, w_ref[...], preferred_element_type=f32) + p_ref[0:1, :]

    wo = w_ref[:, WO_OFF:WO_OFF + H]                 # (H, H) aligned-prefix lane read (no rotate)
    bo_row = p_ref[1:2, 0:H]                         # (1, H)
    R = B * SQ

    # --- unrolled per-(batch, head) loop; head merge folded into the output dense ---
    y_parts = []
    for b in range(B):
        mrow = mask_ref[b:b + 1, :]                  # (1, SK) additive mask row, broadcast below
        acc_b = x[b * SQ:(b + 1) * SQ, :] + bo_row   # residual + output-dense bias
        for n in range(NH):
            q_h = proj[b * SQ:(b + 1) * SQ, Q_OFF + n * D:Q_OFF + (n + 1) * D]      # (SQ, D)
            k_h = proj[R + b * SK:R + (b + 1) * SK, K_OFF + n * D:K_OFF + (n + 1) * D]  # (SK, D)
            v_h = proj[R + b * SK:R + (b + 1) * SK, V_OFF + n * D:V_OFF + (n + 1) * D]  # (SK, D)

            # scores = q_h @ k_h^T  (scale already folded into Wq'; 8x8 kT folded into MXU feed)
            s = jax.lax.dot_general(q_h, k_h, (((1,), (1,)), ((), ())),
                                    preferred_element_type=f32)                      # (SQ, SK)
            s = s + mrow                              # additive BERT mask
            scores_ref[b * NH + n] = s                # pre-softmax scores, head-major store

            # per-head softmax (EUP exp + approx reciprocal on the otherwise-idle EUP slot)
            m = jnp.max(s, axis=-1, keepdims=True)
            e = jnp.exp(s - m)
            p_attn = e * pl.reciprocal(jnp.sum(e, axis=-1, keepdims=True), approx=True)

            # ctx_h = probs @ V ; merge-heads + output dense fused:
            #   y += ctx_h @ Wo^T[nD:(n+1)D, :]   (tiny extra MXU pushes; MXU is idle anyway)
            ctx_h = jnp.dot(p_attn, v_h, preferred_element_type=f32)                 # (SQ, D)
            acc_b = acc_b + jnp.dot(ctx_h, wo[n * D:(n + 1) * D, :],
                                    preferred_element_type=f32)
        y_parts.append(acc_b)

    # --- BertSelfOutput epilogue: LayerNorm(dense(ctx) + bo + input)  (dropout = identity) ---
    y = jnp.concatenate(y_parts, axis=0)              # (B*SQ, H) sublane concat (cheap)
    mu = jnp.mean(y, axis=-1, keepdims=True)
    var = jnp.mean(jnp.square(y - mu), axis=-1, keepdims=True)
    inv = jax.lax.rsqrt(var + LN_EPS)
    out_ref[...] = (y - mu) * inv * p_ref[2:3, 0:H] + p_ref[3:4, 0:H]


@jax.jit
def bert_x_attention(input_tensor, ctx_tensor, ctx_att_mask, w_slab, p_slab):
    """input_tensor: [B, SQ, H] f32, ctx_tensor: [B, SK, CD] f32,
       ctx_att_mask: [B, 1, 1, SK] additive f32,
       w_slab/p_slab: prepacked once at init by pack_bert_xattn_params.
       Returns (attention_output [B,SQ,H], attention_scores [B,NH,SQ,SK])."""
    f32 = jnp.float32
    # Only free contiguous reshapes here; no per-call weight preprocessing.
    x2 = input_tensor.reshape(B * SQ, H)
    c2 = ctx_tensor.reshape(B * SK, CD)
    mask2 = ctx_att_mask.reshape(B, SK)

    # No grid: one invocation, whole arrays as single VMEM blocks (default BlockSpecs).
    # v7x note: at B=2/SQ=8 keep ungridded; a (B,) parallel grid only pays off for larger work.
    out2, scores3 = pl.pallas_call(
        _bert_xattn_kernel,
        out_shape=(
            jax.ShapeDtypeStruct((B * SQ, H), f32),
            jax.ShapeDtypeStruct((B * NH, SQ, SK), f32),
        ),
    )(x2, c2, mask2, w_slab, p_slab)

    # Contiguous (free) reshapes back to the PyTorch output layout.
    return out2.reshape(B, SQ, H), scores3.reshape(B, NH, SQ, SK)


def _reference(input_tensor, ctx_tensor, ctx_att_mask,
               wq, bq, wk, bk, wv, bv, wo, bo, gamma, beta):
    """Plain-JAX reference mirroring the PyTorch BertXAttention forward (eval mode)."""
    q = input_tensor @ wq.T + bq
    k = ctx_tensor @ wk.T + bk
    v = ctx_tensor @ wv.T + bv

    def split(x, S):  # [B,S,H] -> [B,NH,S,D]
        return x.reshape(B, S, NH, D).transpose(0, 2, 1, 3)

    ql, kl, vl = split(q, SQ), split(k, SK), split(v, SK)
    scores = jnp.einsum('bhqd,bhkd->bhqk', ql, kl) / math.sqrt(D)
    scores = scores + ctx_att_mask                       # [B,1,1,SK] broadcast
    probs = jax.nn.softmax(scores, axis=-1)
    ctx = jnp.einsum('bhqk,bhkd->bhqd', probs, vl)
    ctx = ctx.transpose(0, 2, 1, 3).reshape(B, SQ, H)

    y = ctx @ wo.T + bo + input_tensor
    mu = y.mean(axis=-1, keepdims=True)
    var = ((y - mu) ** 2).mean(axis=-1, keepdims=True)
    out = (y - mu) / jnp.sqrt(var + LN_EPS) * gamma + beta
    return out, scores


if __name__ == "__main__":
    key = jax.random.PRNGKey(0)
    (k_x, k_c, k_wq, k_bq, k_wk, k_bk, k_wv, k_bv,
     k_wo, k_bo, k_g, k_be) = jax.random.split(key, 12)

    input_tensor = jax.random.normal(k_x, (B, SQ, H), dtype=jnp.float32)
    ctx_tensor = jax.random.normal(k_c, (B, SK, CD), dtype=jnp.float32)

    # Additive attention mask: mask out the last 2 ctx key positions of batch 1.
    pad = jnp.zeros((B, SK), dtype=jnp.float32)
    pad = pad.at[1, -2:].set(-10000.0)
    ctx_att_mask = pad.reshape(B, 1, 1, SK)

    s = 0.02
    wq = s * jax.random.normal(k_wq, (H, H), dtype=jnp.float32)
    bq = s * jax.random.normal(k_bq, (H,), dtype=jnp.float32)
    wk = s * jax.random.normal(k_wk, (H, CD), dtype=jnp.float32)
    bk = s * jax.random.normal(k_bk, (H,), dtype=jnp.float32)
    wv = s * jax.random.normal(k_wv, (H, CD), dtype=jnp.float32)
    bv = s * jax.random.normal(k_bv, (H,), dtype=jnp.float32)
    wo = s * jax.random.normal(k_wo, (H, H), dtype=jnp.float32)
    bo = s * jax.random.normal(k_bo, (H,), dtype=jnp.float32)
    gamma = 1.0 + 0.1 * jax.random.normal(k_g, (H,), dtype=jnp.float32)
    beta = 0.1 * jax.random.normal(k_be, (H,), dtype=jnp.float32)

    # One-time parameter packing (init-time; outside the per-call jitted path).
    w_slab, p_slab = pack_bert_xattn_params(wq, bq, wk, bk, wv, bv, wo, bo, gamma, beta)
    jax.block_until_ready((w_slab, p_slab))

    out, scores = bert_x_attention(input_tensor, ctx_tensor, ctx_att_mask, w_slab, p_slab)
    jax.block_until_ready((out, scores))

    out_ref, scores_ref = _reference(input_tensor, ctx_tensor, ctx_att_mask,
                                     wq, bq, wk, bk, wv, bv, wo, bo, gamma, beta)

    assert out.shape == (B, SQ, H) and scores.shape == (B, NH, SQ, SK)
    assert jnp.allclose(out, out_ref, atol=1e-3, rtol=1e-3)
    assert jnp.allclose(scores, scores_ref, atol=1e-3, rtol=1e-3)

    print("KERNEL_OK")
</pallas_src>

<mosaic_0001>
module attributes {stable_mosaic.version = 11 : i64} {
  func.func @_bert_xattn_kernel(%arg0: memref<16x32xf32, #tpu.memory_space<vmem>>, %arg1: memref<16x32xf32, #tpu.memory_space<vmem>>, %arg2: memref<2x8xf32, #tpu.memory_space<vmem>>, %arg3: memref<32x128xf32, #tpu.memory_space<vmem>>, %arg4: memref<4x128xf32, #tpu.memory_space<vmem>>, %arg5: memref<16x32xf32, #tpu.memory_space<vmem>>, %arg6: memref<8x8x8xf32, #tpu.memory_space<vmem>>) attributes {dimension_semantics = [], scalar_prefetch = 0 : i64, scratch_operands = 0 : i64, tpu.core_type = #tpu.core_type<tc>} {
    %c0 = arith.constant 0 : index
    %c0_0 = arith.constant 0 : index
    %0 = vector.load %arg0[%c0, %c0_0] : memref<16x32xf32, #tpu.memory_space<vmem>>, vector<16x32xf32>
    %c0_1 = arith.constant 0 : index
    %c0_2 = arith.constant 0 : index
    %1 = vector.load %arg1[%c0_1, %c0_2] : memref<16x32xf32, #tpu.memory_space<vmem>>, vector<16x32xf32>
    %2 = tpu.concatenate %0, %1 in 0 : vector<16x32xf32>, vector<16x32xf32> -> vector<32x32xf32>
    %c0_3 = arith.constant 0 : index
    %c0_4 = arith.constant 0 : index
    %3 = vector.load %arg3[%c0_3, %c0_4] : memref<32x128xf32, #tpu.memory_space<vmem>>, vector<32x128xf32>
    %cst = arith.constant dense<0.000000e+00> : vector<32x128xf32>
    %4 = tpu.matmul %2, %3, %cst {dimension_numbers = #tpu.dot_dimension_numbers<[1], [0], [0], [1], [0, 0, 1, 1], [], []>} : vector<32x32xf32>, vector<32x128xf32>, vector<32x128xf32> -> vector<32x128xf32>
    %c0_5 = arith.constant 0 : index
    %c0_6 = arith.constant 0 : index
    %5 = vector.load %arg4[%c0_5, %c0_6] : memref<4x128xf32, #tpu.memory_space<vmem>>, vector<1x128xf32>
    %6 = vector.broadcast %5 : vector<1x128xf32> to vector<32x128xf32>
    %7 = arith.addf %4, %6 : vector<32x128xf32>
    %c0_7 = arith.constant 0 : index
    %c0_8 = arith.constant 0 : index
    %8 = vector.load %arg3[%c0_7, %c0_8] : memref<32x128xf32, #tpu.memory_space<vmem>>, vector<32x32xf32>
    %c1 = arith.constant 1 : index
    %c0_9 = arith.constant 0 : index
    %9 = vector.load %arg4[%c1, %c0_9] : memref<4x128xf32, #tpu.memory_space<vmem>>, vector<1x32xf32>
    %c0_10 = arith.constant 0 : index
    %c0_11 = arith.constant 0 : index
    %10 = vector.load %arg2[%c0_10, %c0_11] : memref<2x8xf32, #tpu.memory_space<vmem>>, vector<1x8xf32>
    %11 = vector.extract_strided_slice %0 {offsets = [0, 0], sizes = [8, 32], strides = [1, 1]} : vector<16x32xf32> to vector<8x32xf32>
    %12 = vector.broadcast %9 : vector<1x32xf32> to vector<8x32xf32>
    %13 = arith.addf %11, %12 : vector<8x32xf32>
    %14 = vector.extract_strided_slice %7 {offsets = [0, 32], sizes = [8, 8], strides = [1, 1]} : vector<32x128xf32> to vector<8x8xf32>
    %15 = vector.extract_strided_slice %7 {offsets = [16, 64], sizes = [8, 8], strides = [1, 1]} : vector<32x128xf32> to vector<8x8xf32>
    %16 = vector.extract_strided_slice %7 {offsets = [16, 96], sizes = [8, 8], strides = [1, 1]} : vector<32x128xf32> to vector<8x8xf32>
    %cst_12 = arith.constant dense<0.000000e+00> : vector<8x8xf32>
    %17 = tpu.matmul %14, %15, %cst_12 {dimension_numbers = #tpu.dot_dimension_numbers<[1], [1], [0], [0], [0, 0, 1, 0], [], []>} : vector<8x8xf32>, vector<8x8xf32>, vector<8x8xf32> -> vector<8x8xf32>
    %18 = vector.broadcast %10 : vector<1x8xf32> to vector<8x8xf32>
    %19 = arith.addf %17, %18 : vector<8x8xf32>
    %c0_13 = arith.constant 0 : index
    %c0_14 = arith.constant 0 : index
    %c0_15 = arith.constant 0 : index
    %20 = vector.load %arg6[%c0_13, %c0_14, %c0_15] : memref<8x8x8xf32, #tpu.memory_space<vmem>>, vector<1x8x8xf32>
    %21 = vector.shape_cast %20 : vector<1x8x8xf32> to vector<8x8xf32>
    %22 = vector.shape_cast %19 : vector<8x8xf32> to vector<1x8x8xf32>
    tpu.vector_store %arg6[%c0_13, %c0_14, %c0_15], %22 {strides = array<i32>} : memref<8x8x8xf32, #tpu.memory_space<vmem>>, vector<1x8x8xf32>,
    %cst_16 = arith.constant dense<0xFF800000> : vector<8xf32>
    %23 = vector.multi_reduction <maximumf>, %19, %cst_16 [1] : vector<8x8xf32> to vector<8xf32>
    %24 = vector.shape_cast %23 : vector<8xf32> to vector<8x1xf32>
    %25 = vector.broadcast %24 : vector<8x1xf32> to vector<8x8xf32>
    %26 = arith.subf %19, %25 : vector<8x8xf32>
    %27 = math.exp %26 : vector<8x8xf32>
    %cst_17 = arith.constant dense<0.000000e+00> : vector<8xf32>
    %28 = vector.multi_reduction <add>, %27, %cst_17 [1] : vector<8x8xf32> to vector<8xf32>
    %29 = vector.shape_cast %28 : vector<8xf32> to vector<8x1xf32>
    %30 = tpu.reciprocal %29 {approx = true} : vector<8x1xf32> -> vector<8x1xf32>
    %31 = vector.broadcast %30 : vector<8x1xf32> to vector<8x8xf32>
    %32 = arith.mulf %27, %31 : vector<8x8xf32>
    %cst_18 = arith.constant dense<0.000000e+00> : vector<8x8xf32>
    %33 = tpu.matmul %32, %16, %cst_18 {dimension_numbers = #tpu.dot_dimension_numbers<[1], [0], [0], [1], [0, 0, 1, 1], [], []>} : vector<8x8xf32>, vector<8x8xf32>, vector<8x8xf32> -> vector<8x8xf32>
    %34 = vector.extract_strided_slice %8 {offsets = [0, 0], sizes = [8, 32], strides = [1, 1]} : vector<32x32xf32> to vector<8x32xf32>
    %cst_19 = arith.constant dense<0.000000e+00> : vector<8x32xf32>
    %35 = tpu.matmul %33, %34, %cst_19 {dimension_numbers = #tpu.dot_dimension_numbers<[1], [0], [0], [1], [0, 0, 1, 1], [], []>} : vector<8x8xf32>, vector<8x32xf32>, vector<8x32xf32> -> vector<8x32xf32>
    %36 = arith.addf %13, %35 : vector<8x32xf32>
    %37 = vector.extract_strided_slice %7 {offsets = [0, 40], sizes = [8, 8], strides = [1, 1]} : vector<32x128xf32> to vector<8x8xf32>
    %38 = vector.extract_strided_slice %7 {offsets = [16, 72], sizes = [8, 8], strides = [1, 1]} : vector<32x128xf32> to vector<8x8xf32>
    %39 = vector.extract_strided_slice %7 {offsets = [16, 104], sizes = [8, 8], strides = [1, 1]} : vector<32x128xf32> to vector<8x8xf32>
    %cst_20 = arith.constant dense<0.000000e+00> : vector<8x8xf32>
    %40 = tpu.matmul %37, %38, %cst_20 {dimension_numbers = #tpu.dot_dimension_numbers<[1], [1], [0], [0], [0, 0, 1, 0], [], []>} : vector<8x8xf32>, vector<8x8xf32>, vector<8x8xf32> -> vector<8x8xf32>
    %41 = vector.broadcast %10 : vector<1x8xf32> to vector<8x8xf32>
    %42 = arith.addf %40, %41 : vector<8x8xf32>
    %c1_21 = arith.constant 1 : index
    %c0_22 = arith.constant 0 : index
    %c0_23 = arith.constant 0 : index
    %43 = vector.load %arg6[%c1_21, %c0_22, %c0_23] : memref<8x8x8xf32, #tpu.memory_space<vmem>>, vector<1x8x8xf32>
    %44 = vector.shape_cast %43 : vector<1x8x8xf32> to vector<8x8xf32>
    %45 = vector.shape_cast %42 : vector<8x8xf32> to vector<1x8x8xf32>
    tpu.vector_store %arg6[%c1_21, %c0_22, %c0_23], %45 {strides = array<i32>} : memref<8x8x8xf32, #tpu.memory_space<vmem>>, vector<1x8x8xf32>,
    %cst_24 = arith.constant dense<0xFF800000> : vector<8xf32>
    %46 = vector.multi_reduction <maximumf>, %42, %cst_24 [1] : vector<8x8xf32> to vector<8xf32>
    %47 = vector.shape_cast %46 : vector<8xf32> to vector<8x1xf32>
    %48 = vector.broadcast %47 : vector<8x1xf32> to vector<8x8xf32>
    %49 = arith.subf %42, %48 : vector<8x8xf32>
    %50 = math.exp %49 : vector<8x8xf32>
    %cst_25 = arith.constant dense<0.000000e+00> : vector<8xf32>
    %51 = vector.multi_reduction <add>, %50, %cst_25 [1] : vector<8x8xf32> to vector<8xf32>
    %52 = vector.shape_cast %51 : vector<8xf32> to vector<8x1xf32>
    %53 = tpu.reciprocal %52 {approx = true} : vector<8x1xf32> -> vector<8x1xf32>
    %54 = vector.broadcast %53 : vector<8x1xf32> to vector<8x8xf32>
    %55 = arith.mulf %50, %54 : vector<8x8xf32>
    %cst_26 = arith.constant dense<0.000000e+00> : vector<8x8xf32>
    %56 = tpu.matmul %55, %39, %cst_26 {dimension_numbers = #tpu.dot_dimension_numbers<[1], [0], [0], [1], [0, 0, 1, 1], [], []>} : vector<8x8xf32>, vector<8x8xf32>, vector<8x8xf32> -> vector<8x8xf32>
    %57 = vector.extract_strided_slice %8 {offsets = [8, 0], sizes = [8, 32], strides = [1, 1]} : vector<32x32xf32> to vector<8x32xf32>
    %cst_27 = arith.constant dense<0.000000e+00> : vector<8x32xf32>
    %58 = tpu.matmul %56, %57, %cst_27 {dimension_numbers = #tpu.dot_dimension_numbers<[1], [0], [0], [1], [0, 0, 1, 1], [], []>} : vector<8x8xf32>, vector<8x32xf32>, vector<8x32xf32> -> vector<8x32xf32>
    %59 = arith.addf %36, %58 : vector<8x32xf32>
    %60 = vector.extract_strided_slice %7 {offsets = [0, 48], sizes = [8, 8], strides = [1, 1]} : vector<32x128xf32> to vector<8x8xf32>
    %61 = vector.extract_strided_slice %7 {offsets = [16, 80], sizes = [8, 8], strides = [1, 1]} : vector<32x128xf32> to vector<8x8xf32>
    %62 = vector.extract_strided_slice %7 {offsets = [16, 112], sizes = [8, 8], strides = [1, 1]} : vector<32x128xf32> to vector<8x8xf32>
    %cst_28 = arith.constant dense<0.000000e+00> : vector<8x8xf32>
    %63 = tpu.matmul %60, %61, %cst_28 {dimension_numbers = #tpu.dot_dimension_numbers<[1], [1], [0], [0], [0, 0, 1, 0], [], []>} : vector<8x8xf32>, vector<8x8xf32>, vector<8x8xf32> -> vector<8x8xf32>
    %64 = vector.broadcast %10 : vector<1x8xf32> to vector<8x8xf32>
    %65 = arith.addf %63, %64 : vector<8x8xf32>
    %c2 = arith.constant 2 : index
    %c0_29 = arith.constant 0 : index
    %c0_30 = arith.constant 0 : index
    %66 = vector.load %arg6[%c2, %c0_29, %c0_30] : memref<8x8x8xf32, #tpu.memory_space<vmem>>, vector<1x8x8xf32>
    %67 = vector.shape_cast %66 : vector<1x8x8xf32> to vector<8x8xf32>
    %68 = vector.shape_cast %65 : vector<8x8xf32> to vector<1x8x8xf32>
    tpu.vector_store %arg6[%c2, %c0_29, %c0_30], %68 {strides = array<i32>} : memref<8x8x8xf32, #tpu.memory_space<vmem>>, vector<1x8x8xf32>,
    %cst_31 = arith.constant dense<0xFF800000> : vector<8xf32>
    %69 = vector.multi_reduction <maximumf>, %65, %cst_31 [1] : vector<8x8xf32> to vector<8xf32>
    %70 = vector.shape_cast %69 : vector<8xf32> to vector<8x1xf32>
    %71 = vector.broadcast %70 : vector<8x1xf32> to vector<8x8xf32>
    %72 = arith.subf %65, %71 : vector<8x8xf32>
    %73 = math.exp %72 : vector<8x8xf32>
    %cst_32 = arith.constant dense<0.000000e+00> : vector<8xf32>
    %74 = vector.multi_reduction <add>, %73, %cst_32 [1] : vector<8x8xf32> to vector<8xf32>
    %75 = vector.shape_cast %74 : vector<8xf32> to vector<8x1xf32>
    %76 = tpu.reciprocal %75 {approx = true} : vector<8x1xf32> -> vector<8x1xf32>
    %77 = vector.broadcast %76 : vector<8x1xf32> to vector<8x8xf32>
    %78 = arith.mulf %73, %77 : vector<8x8xf32>
    %cst_33 = arith.constant dense<0.000000e+00> : vector<8x8xf32>
    %79 = tpu.matmul %78, %62, %cst_33 {dimension_numbers = #tpu.dot_dimension_numbers<[1], [0], [0], [1], [0, 0, 1, 1], [], []>} : vector<8x8xf32>, vector<8x8xf32>, vector<8x8xf32> -> vector<8x8xf32>
    %80 = vector.extract_strided_slice %8 {offsets = [16, 0], sizes = [8, 32], strides = [1, 1]} : vector<32x32xf32> to vector<8x32xf32>
    %cst_34 = arith.constant dense<0.000000e+00> : vector<8x32xf32>
    %81 = tpu.matmul %79, %80, %cst_34 {dimension_numbers = #tpu.dot_dimension_numbers<[1], [0], [0], [1], [0, 0, 1, 1], [], []>} : vector<8x8xf32>, vector<8x32xf32>, vector<8x32xf32> -> vector<8x32xf32>
    %82 = arith.addf %59, %81 : vector<8x32xf32>
    %83 = vector.extract_strided_slice %7 {offsets = [0, 56], sizes = [8, 8], strides = [1, 1]} : vector<32x128xf32> to vector<8x8xf32>
    %84 = vector.extract_strided_slice %7 {offsets = [16, 88], sizes = [8, 8], strides = [1, 1]} : vector<32x128xf32> to vector<8x8xf32>
    %85 = vector.extract_strided_slice %7 {offsets = [16, 120], sizes = [8, 8], strides = [1, 1]} : vector<32x128xf32> to vector<8x8xf32>
    %cst_35 = arith.constant dense<0.000000e+00> : vector<8x8xf32>
    %86 = tpu.matmul %83, %84, %cst_35 {dimension_numbers = #tpu.dot_dimension_numbers<[1], [1], [0], [0], [0, 0, 1, 0], [], []>} : vector<8x8xf32>, vector<8x8xf32>, vector<8x8xf32> -> vector<8x8xf32>
    %87 = vector.broadcast %10 : vector<1x8xf32> to vector<8x8xf32>
    %88 = arith.addf %86, %87 : vector<8x8xf32>
    %c3 = arith.constant 3 : index
    %c0_36 = arith.constant 0 : index
    %c0_37 = arith.constant 0 : index
    %89 = vector.load %arg6[%c3, %c0_36, %c0_37] : memref<8x8x8xf32, #tpu.memory_space<vmem>>, vector<1x8x8xf32>
    %90 = vector.shape_cast %89 : vector<1x8x8xf32> to vector<8x8xf32>
    %91 = vector.shape_cast %88 : vector<8x8xf32> to vector<1x8x8xf32>
    tpu.vector_store %arg6[%c3, %c0_36, %c0_37], %91 {strides = array<i32>} : memref<8x8x8xf32, #tpu.memory_space<vmem>>, vector<1x8x8xf32>,
    %cst_38 = arith.constant dense<0xFF800000> : vector<8xf32>
    %92 = vector.multi_reduction <maximumf>, %88, %cst_38 [1] : vector<8x8xf32> to vector<8xf32>
    %93 = vector.shape_cast %92 : vector<8xf32> to vector<8x1xf32>
    %94 = vector.broadcast %93 : vector<8x1xf32> to vector<8x8xf32>
    %95 = arith.subf %88, %94 : vector<8x8xf32>
    %96 = math.exp %95 : vector<8x8xf32>
    %cst_39 = arith.constant dense<0.000000e+00> : vector<8xf32>
    %97 = vector.multi_reduction <add>, %96, %cst_39 [1] : vector<8x8xf32> to vector<8xf32>
    %98 = vector.shape_cast %97 : vector<8xf32> to vector<8x1xf32>
    %99 = tpu.reciprocal %98 {approx = true} : vector<8x1xf32> -> vector<8x1xf32>
    %100 = vector.broadcast %99 : vector<8x1xf32> to vector<8x8xf32>
    %101 = arith.mulf %96, %100 : vector<8x8xf32>
    %cst_40 = arith.constant dense<0.000000e+00> : vector<8x8xf32>
    %102 = tpu.matmul %101, %85, %cst_40 {dimension_numbers = #tpu.dot_dimension_numbers<[1], [0], [0], [1], [0, 0, 1, 1], [], []>} : vector<8x8xf32>, vector<8x8xf32>, vector<8x8xf32> -> vector<8x8xf32>
    %103 = vector.extract_strided_slice %8 {offsets = [24, 0], sizes = [8, 32], strides = [1, 1]} : vector<32x32xf32> to vector<8x32xf32>
    %cst_41 = arith.constant dense<0.000000e+00> : vector<8x32xf32>
    %104 = tpu.matmul %102, %103, %cst_41 {dimension_numbers = #tpu.dot_dimension_numbers<[1], [0], [0], [1], [0, 0, 1, 1], [], []>} : vector<8x8xf32>, vector<8x32xf32>, vector<8x32xf32> -> vector<8x32xf32>
    %105 = arith.addf %82, %104 : vector<8x32xf32>
    %c1_42 = arith.constant 1 : index
    %c0_43 = arith.constant 0 : index
    %106 = vector.load %arg2[%c1_42, %c0_43] : memref<2x8xf32, #tpu.memory_space<vmem>>, vector<1x8xf32>
    %107 = vector.extract_strided_slice %0 {offsets = [8, 0], sizes = [8, 32], strides = [1, 1]} : vector<16x32xf32> to vector<8x32xf32>
    %108 = vector.broadcast %9 : vector<1x32xf32> to vector<8x32xf32>
    %109 = arith.addf %107, %108 : vector<8x32xf32>
    %110 = vector.extract_strided_slice %7 {offsets = [8, 32], sizes = [8, 8], strides = [1, 1]} : vector<32x128xf32> to vector<8x8xf32>
    %111 = vector.extract_strided_slice %7 {offsets = [24, 64], sizes = [8, 8], strides = [1, 1]} : vector<32x128xf32> to vector<8x8xf32>
    %112 = vector.extract_strided_slice %7 {offsets = [24, 96], sizes = [8, 8], strides = [1, 1]} : vector<32x128xf32> to vector<8x8xf32>
    %cst_44 = arith.constant dense<0.000000e+00> : vector<8x8xf32>
    %113 = tpu.matmul %110, %111, %cst_44 {dimension_numbers = #tpu.dot_dimension_numbers<[1], [1], [0], [0], [0, 0, 1, 0], [], []>} : vector<8x8xf32>, vector<8x8xf32>, vector<8x8xf32> -> vector<8x8xf32>
    %114 = vector.broadcast %106 : vector<1x8xf32> to vector<8x8xf32>
    %115 = arith.addf %113, %114 : vector<8x8xf32>
    %c4 = arith.constant 4 : index
    %c0_45 = arith.constant 0 : index
    %c0_46 = arith.constant 0 : index
    %116 = vector.load %arg6[%c4, %c0_45, %c0_46] : memref<8x8x8xf32, #tpu.memory_space<vmem>>, vector<1x8x8xf32>
    %117 = vector.shape_cast %116 : vector<1x8x8xf32> to vector<8x8xf32>
    %118 = vector.shape_cast %115 : vector<8x8xf32> to vector<1x8x8xf32>
    tpu.vector_store %arg6[%c4, %c0_45, %c0_46], %118 {strides = array<i32>} : memref<8x8x8xf32, #tpu.memory_space<vmem>>, vector<1x8x8xf32>,
    %cst_47 = arith.constant dense<0xFF800000> : vector<8xf32>
    %119 = vector.multi_reduction <maximumf>, %115, %cst_47 [1] : vector<8x8xf32> to vector<8xf32>
    %120 = vector.shape_cast %119 : vector<8xf32> to vector<8x1xf32>
    %121 = vector.broadcast %120 : vector<8x1xf32> to vector<8x8xf32>
    %122 = arith.subf %115, %121 : vector<8x8xf32>
    %123 = math.exp %122 : vector<8x8xf32>
    %cst_48 = arith.constant dense<0.000000e+00> : vector<8xf32>
    %124 = vector.multi_reduction <add>, %123, %cst_48 [1] : vector<8x8xf32> to vector<8xf32>
    %125 = vector.shape_cast %124 : vector<8xf32> to vector<8x1xf32>
    %126 = tpu.reciprocal %125 {approx = true} : vector<8x1xf32> -> vector<8x1xf32>
    %127 = vector.broadcast %126 : vector<8x1xf32> to vector<8x8xf32>
    %128 = arith.mulf %123, %127 : vector<8x8xf32>
    %cst_49 = arith.constant dense<0.000000e+00> : vector<8x8xf32>
    %129 = tpu.matmul %128, %112, %cst_49 {dimension_numbers = #tpu.dot_dimension_numbers<[1], [0], [0], [1], [0, 0, 1, 1], [], []>} : vector<8x8xf32>, vector<8x8xf32>, vector<8x8xf32> -> vector<8x8xf32>
    %130 = vector.extract_strided_slice %8 {offsets = [0, 0], sizes = [8, 32], strides = [1, 1]} : vector<32x32xf32> to vector<8x32xf32>
    %cst_50 = arith.constant dense<0.000000e+00> : vector<8x32xf32>
    %131 = tpu.matmul %129, %130, %cst_50 {dimension_numbers = #tpu.dot_dimension_numbers<[1], [0], [0], [1], [0, 0, 1, 1], [], []>} : vector<8x8xf32>, vector<8x32xf32>, vector<8x32xf32> -> vector<8x32xf32>
    %132 = arith.addf %109, %131 : vector<8x32xf32>
    %133 = vector.extract_strided_slice %7 {offsets = [8, 40], sizes = [8, 8], strides = [1, 1]} : vector<32x128xf32> to vector<8x8xf32>
    %134 = vector.extract_strided_slice %7 {offsets = [24, 72], sizes = [8, 8], strides = [1, 1]} : vector<32x128xf32> to vector<8x8xf32>
    %135 = vector.extract_strided_slice %7 {offsets = [24, 104], sizes = [8, 8], strides = [1, 1]} : vector<32x128xf32> to vector<8x8xf32>
    %cst_51 = arith.constant dense<0.000000e+00> : vector<8x8xf32>
    %136 = tpu.matmul %133, %134, %cst_51 {dimension_numbers = #tpu.dot_dimension_numbers<[1], [1], [0], [0], [0, 0, 1, 0], [], []>} : vector<8x8xf32>, vector<8x8xf32>, vector<8x8xf32> -> vector<8x8xf32>
    %137 = vector.broadcast %106 : vector<1x8xf32> to vector<8x8xf32>
    %138 = arith.addf %136, %137 : vector<8x8xf32>
    %c5 = arith.constant 5 : index
    %c0_52 = arith.constant 0 : index
    %c0_53 = arith.constant 0 : index
    %139 = vector.load %arg6[%c5, %c0_52, %c0_53] : memref<8x8x8xf32, #tpu.memory_space<vmem>>, vector<1x8x8xf32>
    %140 = vector.shape_cast %139 : vector<1x8x8xf32> to vector<8x8xf32>
    %141 = vector.shape_cast %138 : vector<8x8xf32> to vector<1x8x8xf32>
    tpu.vector_store %arg6[%c5, %c0_52, %c0_53], %141 {strides = array<i32>} : memref<8x8x8xf32, #tpu.memory_space<vmem>>, vector<1x8x8xf32>,
    %cst_54 = arith.constant dense<0xFF800000> : vector<8xf32>
    %142 = vector.multi_reduction <maximumf>, %138, %cst_54 [1] : vector<8x8xf32> to vector<8xf32>
    %143 = vector.shape_cast %142 : vector<8xf32> to vector<8x1xf32>
    %144 = vector.broadcast %143 : vector<8x1xf32> to vector<8x8xf32>
    %145 = arith.subf %138, %144 : vector<8x8xf32>
    %146 = math.exp %145 : vector<8x8xf32>
    %cst_55 = arith.constant dense<0.000000e+00> : vector<8xf32>
    %147 = vector.multi_reduction <add>, %146, %cst_55 [1] : vector<8x8xf32> to vector<8xf32>
    %148 = vector.shape_cast %147 : vector<8xf32> to vector<8x1xf32>
    %149 = tpu.reciprocal %148 {approx = true} : vector<8x1xf32> -> vector<8x1xf32>
    %150 = vector.broadcast %149 : vector<8x1xf32> to vector<8x8xf32>
    %151 = arith.mulf %146, %150 : vector<8x8xf32>
    %cst_56 = arith.constant dense<0.000000e+00> : vector<8x8xf32>
    %152 = tpu.matmul %151, %135, %cst_56 {dimension_numbers = #tpu.dot_dimension_numbers<[1], [0], [0], [1], [0, 0, 1, 1], [], []>} : vector<8x8xf32>, vector<8x8xf32>, vector<8x8xf32> -> vector<8x8xf32>
    %153 = vector.extract_strided_slice %8 {offsets = [8, 0], sizes = [8, 32], strides = [1, 1]} : vector<32x32xf32> to vector<8x32xf32>
    %cst_57 = arith.constant dense<0.000000e+00> : vector<8x32xf32>
    %154 = tpu.matmul %152, %153, %cst_57 {dimension_numbers = #tpu.dot_dimension_numbers<[1], [0], [0], [1], [0, 0, 1, 1], [], []>} : vector<8x8xf32>, vector<8x32xf32>, vector<8x32xf32> -> vector<8x32xf32>
    %155 = arith.addf %132, %154 : vector<8x32xf32>
    %156 = vector.extract_strided_slice %7 {offsets = [8, 48], sizes = [8, 8], strides = [1, 1]} : vector<32x128xf32> to vector<8x8xf32>
    %157 = vector.extract_strided_slice %7 {offsets = [24, 80], sizes = [8, 8], strides = [1, 1]} : vector<32x128xf32> to vector<8x8xf32>
    %158 = vector.extract_strided_slice %7 {offsets = [24, 112], sizes = [8, 8], strides = [1, 1]} : vector<32x128xf32> to vector<8x8xf32>
    %cst_58 = arith.constant dense<0.000000e+00> : vector<8x8xf32>
    %159 = tpu.matmul %156, %157, %cst_58 {dimension_numbers = #tpu.dot_dimension_numbers<[1], [1], [0], [0], [0, 0, 1, 0], [], []>} : vector<8x8xf32>, vector<8x8xf32>, vector<8x8xf32> -> vector<8x8xf32>
    %160 = vector.broadcast %106 : vector<1x8xf32> to vector<8x8xf32>
    %161 = arith.addf %159, %160 : vector<8x8xf32>
    %c6 = arith.constant 6 : index
    %c0_59 = arith.constant 0 : index
    %c0_60 = arith.constant 0 : index
    %162 = vector.load %arg6[%c6, %c0_59, %c0_60] : memref<8x8x8xf32, #tpu.memory_space<vmem>>, vector<1x8x8xf32>
    %163 = vector.shape_cast %162 : vector<1x8x8xf32> to vector<8x8xf32>
    %164 = vector.shape_cast %161 : vector<8x8xf32> to vector<1x8x8xf32>
    tpu.vector_store %arg6[%c6, %c0_59, %c0_60], %164 {strides = array<i32>} : memref<8x8x8xf32, #tpu.memory_space<vmem>>, vector<1x8x8xf32>,
    %cst_61 = arith.constant dense<0xFF800000> : vector<8xf32>
    %165 = vector.multi_reduction <maximumf>, %161, %cst_61 [1] : vector<8x8xf32> to vector<8xf32>
    %166 = vector.shape_cast %165 : vector<8xf32> to vector<8x1xf32>
    %167 = vector.broadcast %166 : vector<8x1xf32> to vector<8x8xf32>
    %168 = arith.subf %161, %167 : vector<8x8xf32>
    %169 = math.exp %168 : vector<8x8xf32>
    %cst_62 = arith.constant dense<0.000000e+00> : vector<8xf32>
    %170 = vector.multi_reduction <add>, %169, %cst_62 [1] : vector<8x8xf32> to vector<8xf32>
    %171 = vector.shape_cast %170 : vector<8xf32> to vector<8x1xf32>
    %172 = tpu.reciprocal %171 {approx = true} : vector<8x1xf32> -> vector<8x1xf32>
    %173 = vector.broadcast %172 : vector<8x1xf32> to vector<8x8xf32>
    %174 = arith.mulf %169, %173 : vector<8x8xf32>
    %cst_63 = arith.constant dense<0.000000e+00> : vector<8x8xf32>
    %175 = tpu.matmul %174, %158, %cst_63 {dimension_numbers = #tpu.dot_dimension_numbers<[1], [0], [0], [1], [0, 0, 1, 1], [], []>} : vector<8x8xf32>, vector<8x8xf32>, vector<8x8xf32> -> vector<8x8xf32>
    %176 = vector.extract_strided_slice %8 {offsets = [16, 0], sizes = [8, 32], strides = [1, 1]} : vector<32x32xf32> to vector<8x32xf32>
    %cst_64 = arith.constant dense<0.000000e+00> : vector<8x32xf32>
    %177 = tpu.matmul %175, %176, %cst_64 {dimension_numbers = #tpu.dot_dimension_numbers<[1], [0], [0], [1], [0, 0, 1, 1], [], []>} : vector<8x8xf32>, vector<8x32xf32>, vector<8x32xf32> -> vector<8x32xf32>
    %178 = arith.addf %155, %177 : vector<8x32xf32>
    %179 = vector.extract_strided_slice %7 {offsets = [8, 56], sizes = [8, 8], strides = [1, 1]} : vector<32x128xf32> to vector<8x8xf32>
    %180 = vector.extract_strided_slice %7 {offsets = [24, 88], sizes = [8, 8], strides = [1, 1]} : vector<32x128xf32> to vector<8x8xf32>
    %181 = vector.extract_strided_slice %7 {offsets = [24, 120], sizes = [8, 8], strides = [1, 1]} : vector<32x128xf32> to vector<8x8xf32>
    %cst_65 = arith.constant dense<0.000000e+00> : vector<8x8xf32>
    %182 = tpu.matmul %179, %180, %cst_65 {dimension_numbers = #tpu.dot_dimension_numbers<[1], [1], [0], [0], [0, 0, 1, 0], [], []>} : vector<8x8xf32>, vector<8x8xf32>, vector<8x8xf32> -> vector<8x8xf32>
    %183 = vector.broadcast %106 : vector<1x8xf32> to vector<8x8xf32>
    %184 = arith.addf %182, %183 : vector<8x8xf32>
    %c7 = arith.constant 7 : index
    %c0_66 = arith.constant 0 : index
    %c0_67 = arith.constant 0 : index
    %185 = vector.load %arg6[%c7, %c0_66, %c0_67] : memref<8x8x8xf32, #tpu.memory_space<vmem>>, vector<1x8x8xf32>
    %186 = vector.shape_cast %185 : vector<1x8x8xf32> to vector<8x8xf32>
    %187 = vector.shape_cast %184 : vector<8x8xf32> to vector<1x8x8xf32>
    tpu.vector_store %arg6[%c7, %c0_66, %c0_67], %187 {strides = array<i32>} : memref<8x8x8xf32, #tpu.memory_space<vmem>>, vector<1x8x8xf32>,
    %cst_68 = arith.constant dense<0xFF800000> : vector<8xf32>
    %188 = vector.multi_reduction <maximumf>, %184, %cst_68 [1] : vector<8x8xf32> to vector<8xf32>
    %189 = vector.shape_cast %188 : vector<8xf32> to vector<8x1xf32>
    %190 = vector.broadcast %189 : vector<8x1xf32> to vector<8x8xf32>
    %191 = arith.subf %184, %190 : vector<8x8xf32>
    %192 = math.exp %191 : vector<8x8xf32>
    %cst_69 = arith.constant dense<0.000000e+00> : vector<8xf32>
    %193 = vector.multi_reduction <add>, %192, %cst_69 [1] : vector<8x8xf32> to vector<8xf32>
    %194 = vector.shape_cast %193 : vector<8xf32> to vector<8x1xf32>
    %195 = tpu.reciprocal %194 {approx = true} : vector<8x1xf32> -> vector<8x1xf32>
    %196 = vector.broadcast %195 : vector<8x1xf32> to vector<8x8xf32>
    %197 = arith.mulf %192, %196 : vector<8x8xf32>
    %cst_70 = arith.constant dense<0.000000e+00> : vector<8x8xf32>
    %198 = tpu.matmul %197, %181, %cst_70 {dimension_numbers = #tpu.dot_dimension_numbers<[1], [0], [0], [1], [0, 0, 1, 1], [], []>} : vector<8x8xf32>, vector<8x8xf32>, vector<8x8xf32> -> vector<8x8xf32>
    %199 = vector.extract_strided_slice %8 {offsets = [24, 0], sizes = [8, 32], strides = [1, 1]} : vector<32x32xf32> to vector<8x32xf32>
    %cst_71 = arith.constant dense<0.000000e+00> : vector<8x32xf32>
    %200 = tpu.matmul %198, %199, %cst_71 {dimension_numbers = #tpu.dot_dimension_numbers<[1], [0], [0], [1], [0, 0, 1, 1], [], []>} : vector<8x8xf32>, vector<8x32xf32>, vector<8x32xf32> -> vector<8x32xf32>
    %201 = arith.addf %178, %200 : vector<8x32xf32>
    %202 = tpu.concatenate %105, %201 in 0 : vector<8x32xf32>, vector<8x32xf32> -> vector<16x32xf32>
    %cst_72 = arith.constant dense<0.000000e+00> : vector<16xf32>
    %203 = vector.multi_reduction <add>, %202, %cst_72 [1] : vector<16x32xf32> to vector<16xf32>
    %204 = vector.shape_cast %203 : vector<16xf32> to vector<16x1xf32>
    %cst_73 = arith.constant 3.200000e+01 : f32
    %205 = vector.broadcast %cst_73 : f32 to vector<16x1xf32>
    %206 = arith.divf %204, %205 : vector<16x1xf32>
    %207 = vector.broadcast %206 : vector<16x1xf32> to vector<16x32xf32>
    %208 = arith.subf %202, %207 : vector<16x32xf32>
    %209 = arith.mulf %208, %208 : vector<16x32xf32>
    %cst_74 = arith.constant dense<0.000000e+00> : vector<16xf32>
    %210 = vector.multi_reduction <add>, %209, %cst_74 [1] : vector<16x32xf32> to vector<16xf32>
    %211 = vector.shape_cast %210 : vector<16xf32> to vector<16x1xf32>
    %cst_75 = arith.constant 3.200000e+01 : f32
    %212 = vector.broadcast %cst_75 : f32 to vector<16x1xf32>
    %213 = arith.divf %211, %212 : vector<16x1xf32>
    %cst_76 = arith.constant 9.99999996E-13 : f32
    %214 = vector.broadcast %cst_76 : f32 to vector<16x1xf32>
    %215 = arith.addf %213, %214 : vector<16x1xf32>
    %216 = math.rsqrt %215 : vector<16x1xf32>
    %217 = vector.broadcast %206 : vector<16x1xf32> to vector<16x32xf32>
    %218 = arith.subf %202, %217 : vector<16x32xf32>
    %219 = vector.broadcast %216 : vector<16x1xf32> to vector<16x32xf32>
    %220 = arith.mulf %218, %219 : vector<16x32xf32>
    %c2_77 = arith.constant 2 : index
    %c0_78 = arith.constant 0 : index
    %221 = vector.load %arg4[%c2_77, %c0_78] : memref<4x128xf32, #tpu.memory_space<vmem>>, vector<1x32xf32>
    %222 = vector.broadcast %221 : vector<1x32xf32> to vector<16x32xf32>
    %223 = arith.mulf %220, %222 : vector<16x32xf32>
    %c3_79 = arith.constant 3 : index
    %c0_80 = arith.constant 0 : index
    %224 = vector.load %arg4[%c3_79, %c0_80] : memref<4x128xf32, #tpu.memory_space<vmem>>, vector<1x32xf32>
    %225 = vector.broadcast %224 : vector<1x32xf32> to vector<16x32xf32>
    %226 = arith.addf %223, %225 : vector<16x32xf32>
    %c0_81 = arith.constant 0 : index
    %c0_82 = arith.constant 0 : index
    %227 = vector.load %arg5[%c0_81, %c0_82] : memref<16x32xf32, #tpu.memory_space<vmem>>, vector<16x32xf32>
    tpu.vector_store %arg5[%c0_81, %c0_82], %226 {strides = array<i32>} : memref<16x32xf32, #tpu.memory_space<vmem>>, vector<16x32xf32>,
    return
  }
}

</mosaic_0001>

<bundles_post_ra>
// kernel: bert_x_attention.1
= control target key start
LH: loop header
LB: loop body
LE: loop exit
PB: predicated region body
PF: predicated region fallthrough
CT: control target
= control target key end

     0   :  { %12 = vsyncpa [#allocation3], 0  ;;  %s3025_s0 = inlined_call_operand.hbm [shape: f32[16,32], index: 0, kind: input, shape index: {}]   ;;  %s3026_s1 = inlined_call_operand.hbm [shape: f32[16,32], index: 1, kind: input, shape index: {}]   ;;  %s3027_s2 = inlined_call_operand.vmem [shape: f32[2,8], index: 2, kind: input, shape index: {}]   ;;  %s3028_s3 = inlined_call_operand.hbm [shape: f32[32,128], index: 3, kind: input, shape index: {}]   ;;  %s3029_s4 = inlined_call_operand.vmem [shape: f32[4,128], index: 4, kind: input, shape index: {}]   ;;  %s3030_s5 = inlined_call_operand.hbm [shape: f32[16,32], index: 5, kind: output, shape index: {0}]   ;;  %s3031_s6 = inlined_call_operand.hbm [shape: f32[8,8,8], index: 6, kind: output, shape index: {1}]  }
   0x1   :  { %13 = vsyncpa [#allocation6], 0 }
   0x2   :  { %14 = vsyncpa [#allocation4], 0 }
   0x3   :  { %15 = vsyncpa [#allocation10], 0  ;;  %s2630_s21 = smov [#allocation5]   ;;  %s2631_s23 = smov [#allocation2]  }
   0x4   :  { %s33_s22 = sshll.u32 %s2630_s21, 4  ;;  %s21_s24 = sshll.u32 %s2631_s23, 4  ;;  %s34_s22 = int_to_ptr.vmem [resolvable:$true] %s33_s22  ;;  %s2685_s24 = int_to_ptr.vmem [resolvable:$true] %s21_s24 }
   0x5   :  { %s2512_s27 = scalar_lea.hbm %s3026_s1, 256 }
   0x6   :  { %p2513_p0 = scmp.ne.s32.totalorder %s3026_s1, %s2512_s27  ;;  %p2516_p1 = scmp.lt.u32.totalorder %s2512_s27, %s3026_s1 }
   0x8   :  { %p2518_p2 = pnand %p2516_p1, %p2513_p0 }
   0xa   :  { %2521 = shalt.err (!%p2518_p2)
}
   0xb   :  { %s2522_s8 = scalar_lea.vmem %s34_s22, 256  ;;  %p2527_p4 = scmp.lt.s32.totalorder %s34_s22, %s34_s22 }
   0xc   :  { %p2523_p3 = scmp.ne.s32.totalorder %s34_s22, %s2522_s8  ;;  %p2528_p5 = scmp.lt.s32.totalorder %s2522_s8, %s2522_s8 }
   0xe   :  { %p2529_p6 = por %p2528_p5, %p2527_p4 }
  0x10   :  { %p2530_p7 = pnand %p2529_p6, %p2523_p3 }
  0x12   :  { %2533 = shalt.err (!%p2530_p7)
}
  0x13   :  { %s2632_s9 = smov 128   ;;  %s2633_s10 = smov 8  }
  0x14   :  { %39 = dma.hbm_to_vmem [thread:$0]  %s3026_s1, 256, %s34_s22, [#allocation6], %s2632_s9, %s2632_s9, %s2633_s10  }
  0x15   :  { %s2534_s15 = scalar_lea.hbm %s3025_s0, 256 }
  0x16   :  { %p2535_p8 = scmp.ne.s32.totalorder %s3025_s0, %s2534_s15  ;;  %p2538_p9 = scmp.lt.u32.totalorder %s2534_s15, %s3025_s0 }
  0x18   :  { %p2540_p10 = pnand %p2538_p9, %p2535_p8 }
  0x1a   :  { %2543 = shalt.err (!%p2540_p10)
}
  0x1b   :  { %s2544_s20 = scalar_lea.vmem %s2685_s24, 256  ;;  %p2549_p12 = scmp.lt.s32.totalorder %s2685_s24, %s2685_s24 }
  0x1c   :  { %p2545_p11 = scmp.ne.s32.totalorder %s2685_s24, %s2544_s20  ;;  %p2550_p13 = scmp.lt.s32.totalorder %s2544_s20, %s2544_s20 }
  0x1e   :  { %p2551_p0 = por %p2550_p13, %p2549_p12 }
  0x20   :  { %p2552_p1 = pnand %p2551_p0, %p2545_p11 }
  0x22   :  { %2555 = shalt.err (!%p2552_p1)
}
  0x23   :  { %27 = dma.hbm_to_vmem [thread:$0]  %s3025_s0, 256, %s2685_s24, [#allocation3], %s2632_s9, %s2632_s9, %s2633_s10  }
  0x24   :  { %s2634_s22 = smov [#allocation7]   ;;  %s2556_s27 = scalar_lea.hbm %s3028_s3, 512 }
  0x25   :  { %s47_s23 = sshll.u32 %s2634_s22, 4  ;;  %p2557_p2 = scmp.ne.s32.totalorder %s3028_s3, %s2556_s27  ;;  %s48_s23 = int_to_ptr.vmem [resolvable:$true] %s47_s23 }
  0x26   :  { %p2560_p3 = scmp.lt.u32.totalorder %s2556_s27, %s3028_s3 }
  0x28   :  { %p2562_p4 = pnand %p2560_p3, %p2557_p2 }
  0x2a   :  { %2565 = shalt.err (!%p2562_p4)
}
  0x2b   :  { %s2566_s8 = scalar_lea.vmem %s48_s23, 512  ;;  %p2571_p6 = scmp.lt.s32.totalorder %s48_s23, %s48_s23 }
  0x2c   :  { %p2567_p5 = scmp.ne.s32.totalorder %s48_s23, %s2566_s8  ;;  %p2572_p7 = scmp.lt.s32.totalorder %s2566_s8, %s2566_s8 }
  0x2e   :  { %p2573_p8 = por %p2572_p7, %p2571_p6 }
  0x30   :  { %p2574_p9 = pnand %p2573_p8, %p2567_p5 }
  0x32   :  { %2577 = shalt.err (!%p2574_p9)
}
  0x33   :  { %53 = dma.hbm_to_vmem [thread:$0]  %s3028_s3, 512, %s48_s23, [#allocation6], %s2632_s9, %s2632_s9, %s2633_s10  }
  0x34   :  { %2622 = dma.done.wait [#allocation3], 256  }
  0x35   :  { %2623 = vsyncadd [#allocation3], 4294967040 }
  0x36   :  { %2624 = dma.done.wait [#allocation6], 768  }
  0x37   :  { %2625 = vsyncadd [#allocation6], 4294966528  ;;  %vm78_vm0 = vcmask 261120   ;;  %v2737_v0 = vld [vmem:[#allocation7] sm:$0xff]  ;;  %v2739_v1 = vld [vmem:[#allocation7 + $0x8] sm:$0xff]  ;;  %v2635_v10 = vmov 0.0  }
  0x38   :  { %v2741_v2 = vld [vmem:[#allocation7 + $0x10] sm:$0xff]  ;;  %v2434_v3 = vpack.c.bf16 %v2739_v1, %v2737_v0  ;;  %v2745_v4 = vld [vmem:[#allocation7 + $0x18] sm:$0xff]  ;;  %v2747_v5 = vld [vmem:[#allocation2] sm:$0xff]  ;;  %2314 = vmatprep.subr.mxu1 %v2635_v10  ;;  %vm2636_vm1 = vmmov 0   ;;  %s2637_s12 = smov 48   ;;  %s2638_s13 = smov 56  }
  0x39   :  { %v2438_v6 = vpack.c.bf16 %v2745_v4, %v2741_v2  ;;  %2308 = vmatprep.mubr.msk.f32.mxu0 %vm78_vm0, %v2747_v5  ;;  %v2753_v7 = vld [vmem:[#allocation2 + $0x8] sm:$0xff]  ;;  %v67_v8 = vld [vmem:[#allocation5] sm:$0xff]  ;;  %v68_v9 = vld [vmem:[#allocation5 + $0x8] sm:$0xff]  ;;  %2316 = vmatprep.mubr.msk.f32.mxu1 %vm2636_vm1, %v2635_v10  ;;  %s2639_s14 = smov 80   ;;  %s2640_s15 = smov 88   ;;  %vm193_vm2 = vcmask 64512  }
  0x3a   :  { %2435 = vmatprep.subr.bf16.mxu0 %v2434_v3  ;;  %v2202_v11 = vld [vmem:[%s3029_s4] ss:$0 sm:$0xff]  ;;  %s2641_s16 = smov 64   ;;  %s2642_s17 = smov 96  }
  0x3b   :  { %2437 = vmatpush3.bf16.msra.mxu0 %v2434_v3  ;;  %v2801_v26 = vld [vmem:[%s3027_s2] ss:$0 sm:$0xff]  ;;  %s2643_s20 = smov 16   ;;  %s2644_s1 = smov 72  }
  0x3c   :  { %2439 = vmatprep.subr.bf16.mxu0 %v2438_v6  ;;  %s2645_s21 = smov 40   ;;  %s2646_s22 = smov 32  }
  0x3d   :  { %s2647_s23 = smov 24  }
  0x3f   :  { %2441 = vmatpush3.bf16.msra.mxu0 %v2438_v6 }
  0x40   :  { %2329 = vmatprep.subr.mxu0 %v2635_v10 }
  0x42   :  { %2309 = vmatmul.mubr.msk.f32.vlgmr.msra.gmra.mrb[0].mxu0 %vm78_vm0, %v2753_v7 }
  0x43   :  { %2311 = vmatprep.mubr.msk.f32.mxu0 %vm78_vm0, %v67_v8  ;;  %v2865_v8 = vld [vmem:[%s3027_s2 + $0x1] ss:$0 sm:$0xff] }
  0x46   :  { %2312 = vmatmul.mubr.msk.f32.gmra.mrb[2].mxu0 %vm78_vm0, %v68_v9 }
  0x47   :  { %2331 = vmatprep.mubr.msk.f32.mxu0 %vm2636_vm1, %v2635_v10 }
 0x115   :  { %v2310_v12 = vpop.f32.mrb[0].mxu0 }
 0x116   :  { %v2768_v13 = vadd.f32 %v2310_v12, %v2202_v11  ;;  %v157_v14 = vpop.f32.mrb[1].mxu0 }
 0x117   :  { %v158_v19 = vadd.f32 %v2202_v11, %v157_v14 }
 0x119   :  { %v2313_v15 = vpop.f32.mrb[2].mxu0 }
 0x11a   :  { %v2770_v16 = vadd.f32 %v2313_v15, %v2202_v11  ;;  %v167_v17 = vpop.f32.mrb[3].mxu0 }
 0x11b   :  { %v2772_v18 = vadd.f32 %v2202_v11, %v167_v17 }
 0x11d   :  { %673 = vrot.lane.b32.xlu1 %v2772_v18, %s2637_s12  ;;  %432 = vrot.lane.b32.xlu0 %v2772_v18, %s2638_s13 }
 0x121   :  { %671 = vrot.lane.b32.xlu1 %v158_v19, %s2639_s14  ;;  %430 = vrot.lane.b32.xlu0 %v158_v19, %s2640_s15 }
 0x125   :  { %191 = vrot.lane.b32.xlu1 %v2772_v18, %s2641_s16 }
 0x129   :  { %188 = vrot.lane.b32.xlu1 %v158_v19, %s2642_s17 }
 0x18f   :  { %v674_v20 = vpop.permute.xlu1 %673  ;;  %v433_v21 = vpop.permute.xlu0 %432 }
 0x190   :  { %2330 = vmatpush3.xpose.msk.msra.mxu0 %vm193_vm2, %v433_v21 }
 0x191   :  { %2344 = vmatprep.subr.mxu0 %v2635_v10 }
 0x193   :  { %v672_v22 = vpop.permute.xlu1 %671  ;;  %v431_v23 = vpop.permute.xlu0 %430 }
 0x194   :  { %2332 = vmatmul.mubr.msk.f32.vlgmr.msra.gmra.mrb[4].mxu0 %vm193_vm2, %v431_v23 }
 0x195   :  { %2345 = vmatpush3.xpose.msk.msra.mxu0 %vm193_vm2, %v674_v20  ;;  %2346 = vmatprep.mubr.msk.f32.mxu0 %vm2636_vm1, %v2635_v10 }
 0x196   :  { %2349 = vmatprep.subr.mxu0 %v2635_v10 }
 0x197   :  { %v192_v24 = vpop.permute.xlu1 %191 }
 0x198   :  { %2315 = vmatpush3.xpose.msk.msra.mxu1 %vm193_vm2, %v192_v24  ;;  %2347 = vmatmul.mubr.msk.f32.vlgmr.msra.gmra.mrb[6].mxu0 %vm193_vm2, %v672_v22 }
 0x199   :  { %2351 = vmatprep.mubr.msk.f32.mxu0 %vm2636_vm1, %v2635_v10  ;;  %2319 = vmatprep.subr.mxu1 %v2635_v10 }
 0x19b   :  { %v189_v25 = vpop.permute.xlu1 %188 }
 0x19c   :  { %2317 = vmatmul.mubr.msk.f32.vlgmr.msra.gmra.mrb[0].mxu1 %vm193_vm2, %v189_v25 }
 0x19d   :  { %2321 = vmatprep.mubr.msk.f32.mxu1 %vm2636_vm1, %v2635_v10 }
 0x267   :  { %v504_v27 = vpop.f32.mrb[4].mxu0 }
 0x268   :  { %v2804_v28 = vadd.f32 %v2801_v26, %v504_v27  ;;  %v2333_v29 = vpop.f32.mrb[5].mxu0 }
 0x26a   :  { %509 = vst.msk [vmem:[#allocation9 + $0x8] sm:$0xff] %vm193_vm2, %v2804_v28  ;;  %v510_v44 = vsel %vm193_vm2, %v2804_v28, -inf }
 0x26b   :  { %v745_v30 = vpop.f32.mrb[6].mxu0 }
 0x26c   :  { %v746_v31 = vadd.f32 %v2801_v26, %v745_v30  ;;  %v2348_v32 = vpop.f32.mrb[7].mxu0 }
 0x26e   :  { %750 = vst.msk [vmem:[#allocation9 + $0x10] sm:$0xff] %vm193_vm2, %v746_v31  ;;  %v751_v33 = vsel %vm193_vm2, %v746_v31, -inf }
 0x26f   :  { %v264_v34 = vpop.f32.mrb[0].mxu1  ;;  %752 = vmax.xlane.f32.xlu0 %v751_v33 }
 0x270   :  { %v265_v35 = vadd.f32 %v2801_v26, %v264_v34  ;;  %v2318_v36 = vpop.f32.mrb[1].mxu1 }
 0x272   :  { %268 = vst.msk [vmem:[#allocation9] sm:$0xff] %vm193_vm2, %v265_v35  ;;  %v269_v43 = vsel %vm193_vm2, %v265_v35, -inf }
 0x285   :  { %762 = vrot.lane.b32.xlu0 %v2772_v18, %s2643_s20 }
 0x289   :  { %912 = vrot.lane.b32.xlu0 %v158_v19, %s2644_s1 }
 0x28d   :  { %1163 = vrot.lane.b32.xlu0 %v2770_v16, %s2641_s16 }
 0x291   :  { %1160 = vrot.lane.b32.xlu0 %v2768_v13, %s2642_s17 }
 0x2fc   :  { %v753_v37 = vpop.xlane.xlu0 %752 }
 0x2fd   :  { %v754_v38 = vsub.f32 %v746_v31, %v753_v37 }
 0x2ff   :  { %v755_v39 = vmul.f32 1.442695, %v754_v38 }
 0x300   :  { %v763_v40 = vpop.permute.xlu0 %762 }
 0x301   :  { %2476 = vpow2.f32 %v755_v39  ;;  %2350 = vmatpush3.msra.mxu0 %v763_v40 }
 0x302   :  { %2359 = vmatprep.subr.mxu0 %v2635_v10 }
 0x304   :  { %v913_v46 = vpop.permute.xlu0 %912 }
 0x308   :  { %v1164_v50 = vpop.permute.xlu0 %1163 }
 0x30b   :  { %v2477_v41 = vpop.eup %2476 }
 0x30c   :  { %v757_v42 = vsel %vm193_vm2, %v2477_v41, 0.0  ;;  %v1161_v51 = vpop.permute.xlu0 %1160 }
 0x30d   :  { %758 = vadd.xlane.f32.xlu1 %v757_v42 }
 0x31e   :  { %914 = vrot.lane.b32.xlu1 %v2772_v18, %s2645_s21 }
 0x342   :  { %270 = vmax.xlane.f32.xlu1 %v269_v43 }
 0x353   :  { %280 = vrot.lane.b32.xlu1 %v2772_v18, %s2646_s22 }
 0x357   :  { %1404 = vrot.lane.b32.xlu1 %v2770_v16, %s2638_s13 }
 0x35b   :  { %1402 = vrot.lane.b32.xlu1 %v2768_v13, %s2640_s15 }
 0x37f   :  { %511 = vmax.xlane.f32.xlu1 %v510_v44 }
 0x390   :  { %521 = vrot.lane.b32.xlu1 %v2772_v18, %s2647_s23 }
 0x394   :  { %1003 = vrot.lane.b32.xlu1 %v2772_v18, %s2633_s10 }
 0x398   :  { %1734 = vrot.lane.b32.xlu1 %v2770_v16, %s2643_s20 }
 0x39a   :  { %v759_v45 = vpop.xlane.xlu1 %758 }
 0x39b   :  { %2478 = vrcp.f32 %v759_v45 }
 0x39c   :  { %1884 = vrot.lane.b32.xlu1 %v2768_v13, %s2644_s1 }
 0x39e   :  { %v915_v49 = vpop.permute.xlu1 %914 }
 0x3a5   :  { %v2479_v47 = vpop.eup %2478 }
 0x3a6   :  { %v761_v48 = vmul.f32 %v2479_v47, %v2477_v41 }
 0x3a8   :  { %2352 = vmatmul.mubr.msk.f32.vlgmr.msra.gmra.mrb[8].mxu0 %vm193_vm2, %v761_v48 }
 0x3a9   :  { %2360 = vmatpush3.xpose.msk.msra.mxu0 %vm193_vm2, %v915_v49  ;;  %2361 = vmatprep.mubr.msk.f32.mxu0 %vm2636_vm1, %v2635_v10 }
 0x3aa   :  { %2374 = vmatprep.subr.mxu0 %v2635_v10 }
 0x3ac   :  { %2362 = vmatmul.mubr.msk.f32.vlgmr.msra.gmra.mrb[10].mxu0 %vm193_vm2, %v913_v46 }
 0x3ad   :  { %2375 = vmatpush3.xpose.msk.msra.mxu0 %vm193_vm2, %v1164_v50  ;;  %2376 = vmatprep.mubr.msk.f32.mxu0 %vm2636_vm1, %v2635_v10 }
 0x3ae   :  { %2379 = vmatprep.subr.mxu0 %v2635_v10 }
 0x3b0   :  { %2377 = vmatmul.mubr.msk.f32.vlgmr.msra.gmra.mrb[12].mxu0 %vm193_vm2, %v1161_v51 }
 0x3b1   :  { %2381 = vmatprep.mubr.msk.f32.mxu0 %vm2636_vm1, %v2635_v10 }
 0x3cf   :  { %v271_v52 = vpop.xlane.xlu1 %270 }
 0x3d0   :  { %v272_v53 = vsub.f32 %v265_v35, %v271_v52 }
 0x3d2   :  { %v273_v54 = vmul.f32 1.442695, %v272_v53 }
 0x3d3   :  { %v281_v55 = vpop.permute.xlu1 %280 }
 0x3d4   :  { %2480 = vpow2.f32 %v273_v54  ;;  %2320 = vmatpush3.msra.mxu1 %v281_v55 }
 0x3d5   :  { %2324 = vmatprep.subr.mxu1 %v2635_v10 }
 0x3d7   :  { %v1405_v22 = vpop.permute.xlu1 %1404 }
 0x3db   :  { %v1403_v23 = vpop.permute.xlu1 %1402 }
 0x3de   :  { %v2481_v56 = vpop.eup %2480 }
 0x3df   :  { %v275_v57 = vsel %vm193_vm2, %v2481_v56, 0.0 }
 0x3e0   :  { %276 = vadd.xlane.f32.xlu0 %v275_v57 }
 0x40c   :  { %v512_v24 = vpop.xlane.xlu1 %511 }
 0x40d   :  { %v513_v25 = vsub.f32 %v2804_v28, %v512_v24 }
 0x410   :  { %v522_v29 = vpop.permute.xlu1 %521 }
 0x414   :  { %v1004_v36 = vpop.permute.xlu1 %1003 }
 0x418   :  { %v1735_v38 = vpop.permute.xlu1 %1734 }
 0x46d   :  { %v277_v58 = vpop.xlane.xlu0 %276 }
 0x46e   :  { %2482 = vrcp.f32 %v277_v58 }
 0x478   :  { %v2483_v59 = vpop.eup %2482 }
 0x479   :  { %v279_v60 = vmul.f32 %v2483_v59, %v2481_v56 }
 0x47b   :  { %2322 = vmatmul.mubr.msk.f32.vlgmr.msra.gmra.mrb[2].mxu1 %vm193_vm2, %v279_v60  ;;  %v2853_v61 = vpop.f32.mrb[8].mxu0 }
 0x47c   :  { %v2353_v62 = vpop.f32.mrb[9].mxu0  ;;  %2325 = vmatpush3.msra.mxu1 %v2737_v0  ;;  %2326 = vmatprep.mubr.msk.f32.mxu1 %vm2636_vm1, %v2635_v10 }
 0x47d   :  { %2334 = vmatprep.subr.mxu1 %v2635_v10 }
 0x47f   :  { %v986_v63 = vpop.f32.mrb[10].mxu0 }
 0x480   :  { %v2860_v3 = vadd.f32 %v2801_v26, %v986_v63  ;;  %v2363_v6 = vpop.f32.mrb[11].mxu0  ;;  %v514_v26 = vmul.f32 1.442695, %v513_v25 }
 0x482   :  { %991 = vst.msk [vmem:[#allocation9 + $0x18] sm:$0xff] %vm193_vm2, %v2860_v3  ;;  %v992_v28 = vsel %vm193_vm2, %v2860_v3, -inf }
 0x483   :  { %v1235_v9 = vpop.f32.mrb[12].mxu0 }
 0x484   :  { %v1236_v11 = vadd.f32 %v2865_v8, %v1235_v9  ;;  %v2378_v12 = vpop.f32.mrb[13].mxu0 }
 0x486   :  { %1240 = vst.msk [vmem:[#allocation9 + $0x20] sm:$0xff] %vm193_vm2, %v1236_v11  ;;  %v1241_v14 = vsel %vm193_vm2, %v1236_v11, -inf }
 0x487   :  { %1242 = vmax.xlane.f32.xlu0 %v1241_v14 }
 0x49d   :  { %1252 = vrot.lane.b32.xlu0 %v2770_v16, %s2646_s22 }
 0x514   :  { %v1243_v15 = vpop.xlane.xlu0 %1242 }
 0x515   :  { %v1244_v17 = vsub.f32 %v1236_v11, %v1243_v15 }
 0x517   :  { %v1245_v18 = vmul.f32 1.442695, %v1244_v17 }
 0x518   :  { %v1253_v19 = vpop.permute.xlu0 %1252 }
 0x519   :  { %2484 = vpow2.f32 %v1245_v18  ;;  %2380 = vmatpush3.msra.mxu0 %v1253_v19 }
 0x51a   :  { %2389 = vmatprep.subr.mxu0 %v2635_v10  ;;  %2486 = vpow2.f32 %v514_v26 }
 0x523   :  { %v2485_v20 = vpop.eup %2484 }
 0x524   :  { %v1247_v21 = vsel %vm193_vm2, %v2485_v20, 0.0  ;;  %v2487_v31 = vpop.eup %2486 }
 0x525   :  { %1248 = vadd.xlane.f32.xlu0 %v1247_v21 }
 0x53b   :  { %1645 = vrot.lane.b32.xlu0 %v2770_v16, %s2637_s12 }
 0x53f   :  { %1643 = vrot.lane.b32.xlu0 %v2768_v13, %s2639_s14  ;;  %v516_v13 = vsel %vm193_vm2, %v2487_v31, 0.0 }
 0x54e   :  { %v352_v27 = vpop.f32.mrb[2].mxu1 }
 0x54f   :  { %v2323_v30 = vpop.f32.mrb[3].mxu1  ;;  %2327 = vmatmul.mubr.msk.f32.vlgmr.msra.gmra.mrb[4].mxu1 %vm193_vm2, %v352_v27 }
 0x550   :  { %2335 = vmatpush3.msra.mxu1 %v522_v29  ;;  %2336 = vmatprep.mubr.msk.f32.mxu1 %vm2636_vm1, %v2635_v10 }
 0x551   :  { %2339 = vmatprep.subr.mxu1 %v2635_v10 }
 0x55e   :  { %517 = vadd.xlane.f32.xlu0 %v516_v13 }
 0x562   :  { %993 = vmax.xlane.f32.xlu0 %v992_v28 }
 0x5b2   :  { %v1249_v32 = vpop.xlane.xlu0 %1248 }
 0x5b3   :  { %2488 = vrcp.f32 %v1249_v32 }
 0x5b6   :  { %v1646_v35 = vpop.permute.xlu0 %1645 }
 0x5ba   :  { %v1644_v37 = vpop.permute.xlu0 %1643 }
 0x5bd   :  { %v2489_v33 = vpop.eup %2488 }
 0x5be   :  { %v1251_v34 = vmul.f32 %v2489_v33, %v2485_v20 }
 0x5c0   :  { %2382 = vmatmul.mubr.msk.f32.vlgmr.msra.gmra.mrb[14].mxu0 %vm193_vm2, %v1251_v34 }
 0x5c1   :  { %2390 = vmatpush3.xpose.msk.msra.mxu0 %vm193_vm2, %v1405_v22  ;;  %2391 = vmatprep.mubr.msk.f32.mxu0 %vm2636_vm1, %v2635_v10 }
 0x5c2   :  { %2404 = vmatprep.subr.mxu0 %v2635_v10 }
 0x5c4   :  { %2392 = vmatmul.mubr.msk.f32.vlgmr.msra.gmra.mrb[16].mxu0 %vm193_vm2, %v1403_v23 }
 0x5c5   :  { %2405 = vmatpush3.xpose.msk.msra.mxu0 %vm193_vm2, %v1646_v35  ;;  %2406 = vmatprep.mubr.msk.f32.mxu0 %vm2636_vm1, %v2635_v10 }
 0x5c6   :  { %2409 = vmatprep.subr.mxu0 %v2635_v10 }
 0x5c8   :  { %2407 = vmatmul.mubr.msk.f32.vlgmr.msra.gmra.mrb[18].mxu0 %vm193_vm2, %v1644_v37 }
 0x5c9   :  { %2410 = vmatpush3.msra.mxu0 %v1735_v38  ;;  %2411 = vmatprep.mubr.msk.f32.mxu0 %vm2636_vm1, %v2635_v10 }
 0x5ca   :  { %2419 = vmatprep.subr.mxu0 %v2635_v10 }
 0x5eb   :  { %v518_v39 = vpop.xlane.xlu0 %517 }
 0x5ec   :  { %2490 = vrcp.f32 %v518_v39 }
 0x5ef   :  { %v994_v42 = vpop.xlane.xlu0 %993 }
 0x5f0   :  { %v995_v43 = vsub.f32 %v2860_v3, %v994_v42 }
 0x5f2   :  { %v996_v44 = vmul.f32 1.442695, %v995_v43 }
 0x5f4   :  { %2492 = vpow2.f32 %v996_v44 }
 0x5f6   :  { %v2491_v40 = vpop.eup %2490 }
 0x5f7   :  { %v520_v41 = vmul.f32 %v2491_v40, %v2487_v31 }
 0x5f9   :  { %2337 = vmatmul.mubr.msk.f32.vlgmr.msra.gmra.mrb[6].mxu1 %vm193_vm2, %v520_v41 }
 0x5fa   :  { %2340 = vmatpush3.msra.mxu1 %v2739_v1  ;;  %2341 = vmatprep.mubr.msk.f32.mxu1 %vm2636_vm1, %v2635_v10 }
 0x5fb   :  { %2354 = vmatprep.subr.mxu1 %v2635_v10 }
 0x5fe   :  { %v2493_v55 = vpop.eup %2492 }
 0x5ff   :  { %v998_v56 = vsel %vm193_vm2, %v2493_v55, 0.0 }
 0x693   :  { %v2908_v45 = vpop.f32.mrb[14].mxu0 }
 0x694   :  { %v2383_v46 = vpop.f32.mrb[15].mxu0 }
 0x697   :  { %v1476_v47 = vpop.f32.mrb[16].mxu0 }
 0x698   :  { %v1477_v48 = vadd.f32 %v2865_v8, %v1476_v47  ;;  %v2393_v49 = vpop.f32.mrb[17].mxu0 }
 0x69a   :  { %1481 = vst.msk [vmem:[#allocation9 + $0x28] sm:$0xff] %vm193_vm2, %v1477_v48  ;;  %v1482_v50 = vsel %vm193_vm2, %v1477_v48, -inf }
 0x69b   :  { %1483 = vmax.xlane.f32.xlu1 %v1482_v50  ;;  %v1717_v51 = vpop.f32.mrb[18].mxu0 }
 0x69c   :  { %v1718_v52 = vadd.f32 %v2865_v8, %v1717_v51  ;;  %v2408_v53 = vpop.f32.mrb[19].mxu0 }
 0x69e   :  { %1722 = vst.msk [vmem:[#allocation9 + $0x30] sm:$0xff] %vm193_vm2, %v1718_v52  ;;  %v1723_v54 = vsel %vm193_vm2, %v1718_v52, -inf }
 0x69f   :  { %1724 = vmax.xlane.f32.xlu0 %v1723_v54  ;;  %v2242_v54 = vld [vmem:[%s3029_s4 + $0x2] ss:$0 sm:$0xff] }
 0x6a3   :  { %999 = vadd.xlane.f32.xlu0 %v998_v56  ;;  %v2243_v56 = vld [vmem:[%s3029_s4 + $0x3] ss:$0 sm:$0xff] }
 0x6ac   :  { %1493 = vrot.lane.b32.xlu1 %v2770_v16, %s2647_s23 }
 0x6b0   :  { %1975 = vrot.lane.b32.xlu1 %v2770_v16, %s2633_s10 }
 0x6cc   :  { %v593_v57 = vpop.f32.mrb[6].mxu1 }
 0x6cd   :  { %v2338_v58 = vpop.f32.mrb[7].mxu1  ;;  %2342 = vmatmul.mubr.msk.f32.vlgmr.msra.gmra.mrb[4].mxu1 %vm193_vm2, %v593_v57 }
 0x6ce   :  { %2355 = vmatpush3.msra.mxu1 %v2741_v2  ;;  %2356 = vmatprep.mubr.msk.f32.mxu1 %vm2636_vm1, %v2635_v10 }
 0x6cf   :  { %2364 = vmatprep.subr.mxu1 %v2635_v10 }
 0x6d5   :  { %2357 = vmatmul.mubr.msk.f32.vlgmr.msra.gmra.mrb[4].mxu1 %vm193_vm2, %v2853_v61  ;;  %v1885_v61 = vpop.permute.xlu1 %1884 }
 0x6d6   :  { %2365 = vmatpush3.msra.mxu1 %v1004_v36  ;;  %2366 = vmatprep.mubr.msk.f32.mxu1 %vm2636_vm1, %v2635_v10 }
 0x6d7   :  { %2369 = vmatprep.subr.mxu1 %v2635_v10 }
 0x728   :  { %v1484_v12 = vpop.xlane.xlu1 %1483 }
 0x729   :  { %v1485_v14 = vsub.f32 %v1477_v48, %v1484_v12 }
 0x72b   :  { %v1486_v15 = vmul.f32 1.442695, %v1485_v14 }
 0x72c   :  { %v1725_v59 = vpop.xlane.xlu0 %1724  ;;  %v1494_v26 = vpop.permute.xlu1 %1493 }
 0x72d   :  { %v1726_v60 = vsub.f32 %v1718_v52, %v1725_v59 }
 0x72f   :  { %v1727_v62 = vmul.f32 1.442695, %v1726_v60 }
 0x730   :  { %v1000_v63 = vpop.xlane.xlu0 %999 }
 0x731   :  { %2494 = vpow2.f32 %v1727_v62 }
 0x732   :  { %2496 = vrcp.f32 %v1000_v63 }
 0x733   :  { %2498 = vpow2.f32 %v1486_v15 }
 0x73b   :  { %v2495_v3 = vpop.eup %2494 }
 0x73c   :  { %v2497_v6 = vpop.eup %2496  ;;  %v1729_v9 = vsel %vm193_vm2, %v2495_v3, 0.0 }
 0x73d   :  { %v1002_v11 = vmul.f32 %v2497_v6, %v2493_v55  ;;  %1730 = vadd.xlane.f32.xlu0 %v1729_v9  ;;  %v2499_v17 = vpop.eup %2498 }
 0x73e   :  { %v1488_v18 = vsel %vm193_vm2, %v2499_v17, 0.0 }
 0x73f   :  { %2367 = vmatmul.mubr.msk.f32.vlgmr.msra.gmra.mrb[8].mxu1 %vm193_vm2, %v1002_v11 }
 0x740   :  { %2370 = vmatpush3.msra.mxu1 %v2745_v4  ;;  %2371 = vmatprep.mubr.msk.f32.mxu1 %vm2636_vm1, %v2635_v10 }
 0x741   :  { %2384 = vmatprep.subr.mxu1 %v2635_v10 }
 0x753   :  { %1886 = vrot.lane.b32.xlu0 %v2770_v16, %s2645_s21 }
 0x772   :  { %1489 = vadd.xlane.f32.xlu0 %v1488_v18 }
 0x7ca   :  { %v1731_v19 = vpop.xlane.xlu0 %1730 }
 0x7cb   :  { %2500 = vrcp.f32 %v1731_v19 }
 0x7ce   :  { %v1887_v22 = vpop.permute.xlu0 %1886 }
 0x7d5   :  { %v2501_v20 = vpop.eup %2500 }
 0x7d6   :  { %v1733_v21 = vmul.f32 %v2501_v20, %v2495_v3 }
 0x7d8   :  { %2412 = vmatmul.mubr.msk.f32.vlgmr.msra.gmra.mrb[20].mxu0 %vm193_vm2, %v1733_v21 }
 0x7d9   :  { %2420 = vmatpush3.xpose.msk.msra.mxu0 %vm193_vm2, %v1887_v22  ;;  %2421 = vmatprep.mubr.msk.f32.mxu0 %vm2636_vm1, %v2635_v10 }
 0x7dc   :  { %2422 = vmatmul.mubr.msk.f32.vlgmr.msra.gmra.mrb[22].mxu0 %vm193_vm2, %v1885_v61 }
 0x7ff   :  { %v1490_v16 = vpop.xlane.xlu0 %1489 }
 0x800   :  { %2502 = vrcp.f32 %v1490_v16 }
 0x80a   :  { %v2503_v25 = vpop.eup %2502 }
 0x80b   :  { %v1492_v27 = vmul.f32 %v2503_v25, %v2499_v17 }
 0x812   :  { %v1075_v23 = vpop.f32.mrb[8].mxu1 }
 0x813   :  { %v2368_v24 = vpop.f32.mrb[9].mxu1  ;;  %2372 = vmatmul.mubr.msk.f32.vlgmr.msra.gmra.mrb[4].mxu1 %vm193_vm2, %v1075_v23 }
 0x814   :  { %2385 = vmatpush3.msra.mxu1 %v2737_v0  ;;  %2386 = vmatprep.mubr.msk.f32.mxu1 %vm2636_vm1, %v2635_v10 }
 0x815   :  { %2394 = vmatprep.subr.mxu1 %v2635_v10 }
 0x817   :  { %2387 = vmatmul.mubr.msk.f32.vlgmr.msra.gmra.mrb[10].mxu1 %vm193_vm2, %v2908_v45 }
 0x818   :  { %2395 = vmatpush3.msra.mxu1 %v1494_v26  ;;  %2396 = vmatprep.mubr.msk.f32.mxu1 %vm2636_vm1, %v2635_v10 }
 0x819   :  { %2399 = vmatprep.subr.mxu1 %v2635_v10 }
 0x81b   :  { %2397 = vmatmul.mubr.msk.f32.vlgmr.msra.gmra.mrb[12].mxu1 %vm193_vm2, %v1492_v27 }
 0x81c   :  { %2400 = vmatpush3.msra.mxu1 %v2739_v1  ;;  %2401 = vmatprep.mubr.msk.f32.mxu1 %vm2636_vm1, %v2635_v10  ;;  %v2207_v1 = vld [vmem:[%s3029_s4 + $0x1] ss:$0 sm:$0xff]  ;;  %s2648_s4 = smov [#allocation9]  }
 0x81d   :  { %2414 = vmatprep.subr.mxu1 %v2635_v10  ;;  %v182_v32 = vadd.f32 %v2207_v1, %v2747_v5  ;;  %v1154_v59 = vadd.f32 %v2207_v1, %v2753_v7  ;;  %s2185_s8 = sshll.u32 %s2648_s4, 4  ;;  %s2186_s8 = int_to_ptr.vmem [resolvable:$true] %s2185_s8 }
 0x81e   :  { %s2578_s0 = scalar_lea.vmem %s2186_s8, 1024  ;;  %p2583_p11 = scmp.lt.s32.totalorder %s2186_s8, %s2186_s8 }
 0x81f   :  { %p2579_p10 = scmp.ne.s32.totalorder %s2186_s8, %s2578_s0  ;;  %p2584_p12 = scmp.lt.s32.totalorder %s2578_s0, %s2578_s0 }
 0x821   :  { %p2585_p13 = por %p2584_p12, %p2583_p11 }
 0x823   :  { %p2586_p0 = pnand %p2585_p13, %p2579_p10 }
 0x8ab   :  { %v1806_v0 = vpop.f32.mrb[20].mxu0 }
 0x8ac   :  { %v2413_v29 = vpop.f32.mrb[21].mxu0 }
 0x8af   :  { %v1958_v30 = vpop.f32.mrb[22].mxu0 }
 0x8b0   :  { %v1959_v31 = vadd.f32 %v2865_v8, %v1958_v30  ;;  %v2423_v13 = vpop.f32.mrb[23].mxu0  ;;  %v1976_v8 = vpop.permute.xlu1 %1975 }
 0x8b2   :  { %1963 = vst.msk [vmem:[#allocation9 + $0x38] sm:$0xff] %vm193_vm2, %v1959_v31  ;;  %v1964_v28 = vsel %vm193_vm2, %v1959_v31, -inf }
 0x8b3   :  { %1965 = vmax.xlane.f32.xlu0 %v1964_v28 }
 0x8e6   :  { %v1148_v33 = vpop.f32.mrb[4].mxu1 }
 0x8e7   :  { %v2442_v34 = vadd.f32 %v1148_v33, %v182_v32  ;;  %v2373_v35 = vpop.f32.mrb[5].mxu1 }
 0x8e9   :  { %v2125_v41 = vsel %vm78_vm0, %v2442_v34, 0.0 }
 0x8ee   :  { %v1565_v36 = vpop.f32.mrb[12].mxu1 }
 0x8ef   :  { %v2398_v37 = vpop.f32.mrb[13].mxu1  ;;  %2402 = vmatmul.mubr.msk.f32.vlgmr.msra.gmra.mrb[10].mxu1 %vm193_vm2, %v1565_v36 }
 0x8f0   :  { %2415 = vmatpush3.msra.mxu1 %v2741_v2  ;;  %2416 = vmatprep.mubr.msk.f32.mxu1 %vm2636_vm1, %v2635_v10 }
 0x8f1   :  { %2424 = vmatprep.subr.mxu1 %v2635_v10 }
 0x8f7   :  { %2417 = vmatmul.mubr.msk.f32.vlgmr.msra.gmra.mrb[10].mxu1 %vm193_vm2, %v1806_v0 }
 0x8f8   :  { %2425 = vmatpush3.msra.mxu1 %v1976_v8  ;;  %2426 = vmatprep.mubr.msk.f32.mxu1 %vm2636_vm1, %v2635_v10 }
 0x8f9   :  { %2429 = vmatprep.subr.mxu1 %v2635_v10 }
 0x940   :  { %v1966_v5 = vpop.xlane.xlu0 %1965 }
 0x941   :  { %v1967_v38 = vsub.f32 %v1959_v31, %v1966_v5 }
 0x943   :  { %v1968_v39 = vmul.f32 1.442695, %v1967_v38 }
 0x945   :  { %2504 = vpow2.f32 %v1968_v39 }
 0x94f   :  { %v2505_v40 = vpop.eup %2504 }
 0x950   :  { %v1970_v2 = vsel %vm193_vm2, %v2505_v40, 0.0 }
 0x951   :  { %1971 = vadd.xlane.f32.xlu0 %v1970_v2 }
 0x955   :  { %2126 = vadd.xlane.f32.xlu0 %v2125_v41 }
 0x9de   :  { %v1972_v42 = vpop.xlane.xlu0 %1971 }
 0x9df   :  { %2506 = vrcp.f32 %v1972_v42 }
 0x9e2   :  { %v2127_v43 = vpop.xlane.xlu0 %2126 }
 0x9e3   :  { %v2132_v44 = vmul.f32 0.03125, %v2127_v43 }
 0x9e5   :  { %v2134_v45 = vsub.f32 %v2442_v34, %v2132_v44 }
 0x9e7   :  { %v2136_v46 = vmul.f32 %v2134_v45, %v2134_v45 }
 0x9e9   :  { %v2507_v47 = vpop.eup %2506  ;;  %v2138_v48 = vsel %vm78_vm0, %v2136_v46, 0.0 }
 0x9ea   :  { %v1974_v49 = vmul.f32 %v2507_v47, %v2505_v40  ;;  %2139 = vadd.xlane.f32.xlu0 %v2138_v48 }
 0x9ec   :  { %2427 = vmatmul.mubr.msk.f32.vlgmr.msra.gmra.mrb[14].mxu1 %vm193_vm2, %v1974_v49 }
 0x9ed   :  { %2430 = vmatpush3.msra.mxu1 %v2745_v4  ;;  %2431 = vmatprep.mubr.msk.f32.mxu1 %vm2636_vm1, %v2635_v10 }
 0xa77   :  { %v2140_v50 = vpop.xlane.xlu0 %2139 }
 0xa78   :  { %v2144_v51 = vmul.f32 0.03125, %v2140_v50 }
 0xa7a   :  { %v2146_v52 = vadd.f32 1e-12, %v2144_v51 }
 0xa7c   :  { %2508 = vrsqrt.f32 %v2146_v52 }
 0xa86   :  { %v2509_v53 = vpop.eup %2508 }
 0xa87   :  { %v2150_v55 = vmul.f32 %v2509_v53, %v2134_v45 }
 0xa89   :  { %v2157_v57 = vmul.f32 %v2242_v54, %v2150_v55 }
 0xa8b   :  { %v2164_v58 = vadd.f32 %v2243_v56, %v2157_v57 }
 0xa8d   :  { %2166 = vst.msk [vmem:[#allocation8] sm:$0xff] %vm78_vm0, %v2164_v58 }
 0xabf   :  { %v2047_v4 = vpop.f32.mrb[14].mxu1 }
 0xac0   :  { %v2428_v10 = vpop.f32.mrb[15].mxu1  ;;  %2432 = vmatmul.mubr.msk.f32.vlgmr.msra.gmra.mrb[10].mxu1 %vm193_vm2, %v2047_v4 }
 0xb93   :  { %v2120_v60 = vpop.f32.mrb[10].mxu1 }
 0xb94   :  { %v2443_v62 = vadd.f32 %v2120_v60, %v1154_v59  ;;  %v2433_v63 = vpop.f32.mrb[11].mxu1 }
 0xb96   :  { %v2128_v3 = vsel %vm78_vm0, %v2443_v62, 0.0 }
 0xb97   :  { %2129 = vadd.xlane.f32.xlu1 %v2128_v3 }
 0xc24   :  { %v2130_v6 = vpop.xlane.xlu1 %2129 }
 0xc25   :  { %v2133_v9 = vmul.f32 0.03125, %v2130_v6 }
 0xc27   :  { %v2135_v11 = vsub.f32 %v2443_v62, %v2133_v9 }
 0xc29   :  { %v2137_v61 = vmul.f32 %v2135_v11, %v2135_v11 }
 0xc2b   :  { %v2141_v12 = vsel %vm78_vm0, %v2137_v61, 0.0 }
 0xc2c   :  { %2142 = vadd.xlane.f32.xlu0 %v2141_v12 }
 0xc2d   :  { %2589 = shalt.err (!%p2586_p0)
}
 0xc2e   :  { %s2590_s11 = scalar_lea.hbm %s3031_s6, 1024 }
 0xc2f   :  { %p2591_p1 = scmp.ne.s32.totalorder %s3031_s6, %s2590_s11  ;;  %p2594_p2 = scmp.lt.u32.totalorder %s2590_s11, %s3031_s6 }
 0xc31   :  { %p2596_p3 = pnand %p2594_p2, %p2591_p1 }
 0xc33   :  { %2599 = shalt.err (!%p2596_p3)
}
 0xc34   :  { %2191 = dma.vmem_to_hbm [thread:$0]  %s2186_s8, 1024, %s3031_s6, [#allocation10], %s2632_s9, %s2632_s9, %s2633_s10  }
 0xc35   :  { %s2649_s18 = smov [#allocation8]  }
 0xc36   :  { %s2173_s19 = sshll.u32 %s2649_s18, 4  ;;  %s2174_s19 = int_to_ptr.vmem [resolvable:$true] %s2173_s19 }
 0xc37   :  { %s2600_s20 = scalar_lea.vmem %s2174_s19, 256  ;;  %p2605_p5 = scmp.lt.s32.totalorder %s2174_s19, %s2174_s19 }
 0xc38   :  { %p2601_p4 = scmp.ne.s32.totalorder %s2174_s19, %s2600_s20  ;;  %p2606_p6 = scmp.lt.s32.totalorder %s2600_s20, %s2600_s20 }
 0xc3a   :  { %p2607_p7 = por %p2606_p6, %p2605_p5 }
 0xc3c   :  { %p2608_p8 = pnand %p2607_p7, %p2601_p4 }
 0xcb9   :  { %v2143_v7 = vpop.xlane.xlu0 %2142 }
 0xcba   :  { %v2145_v14 = vmul.f32 0.03125, %v2143_v7 }
 0xcbc   :  { %v2147_v15 = vadd.f32 1e-12, %v2145_v14 }
 0xcbe   :  { %2510 = vrsqrt.f32 %v2147_v15 }
 0xcc8   :  { %v2511_v17 = vpop.eup %2510 }
 0xcc9   :  { %v2151_v18 = vmul.f32 %v2511_v17, %v2135_v11 }
 0xccb   :  { %v2158_v19 = vmul.f32 %v2242_v54, %v2151_v18 }
 0xccd   :  { %v2165_v20 = vadd.f32 %v2243_v56, %v2158_v19 }
 0xccf   :  { %2167 = vst.msk [vmem:[#allocation8 + $0x8] sm:$0xff] %vm78_vm0, %v2165_v20 }
 0xcd0   :  { %2611 = shalt.err (!%p2608_p8)
}
 0xcd1   :  { %s2612_s21 = scalar_lea.hbm %s3030_s5, 256 }
 0xcd2   :  { %p2613_p9 = scmp.ne.s32.totalorder %s3030_s5, %s2612_s21  ;;  %p2616_p10 = scmp.lt.u32.totalorder %s2612_s21, %s3030_s5 }
 0xcd4   :  { %p2618_p11 = pnand %p2616_p10, %p2613_p9 }
 0xcd6   :  { %2621 = shalt.err (!%p2618_p11)
}
 0xcd7   :  { %2179 = dma.vmem_to_hbm [thread:$0]  %s2174_s19, 256, %s3030_s5, [#allocation4], %s2632_s9, %s2632_s9, %s2633_s10  }
 0xcd8   :  { %2626 = dma.done.wait [#allocation4], 256  }
 0xcd9   :  { %2627 = vsyncadd [#allocation4], 4294967040 }
 0xcda   :  { %2628 = dma.done.wait [#allocation10], 1024  }
 0xcdb   :  { %2629 = vsyncadd [#allocation10], 4294966272 }
 0xcdc   :  { %2198 = vsyncpa [#allocation3], 1 }
 0xcdd   :  { %2199 = vsyncpa [#allocation6], 1 }
 0xcde   :  { %2200 = vsyncpa [#allocation4], 1 }
 0xcdf   :  { %2201 = vsyncpa [#allocation10], 1 }

</bundles_post_ra>
